<compile_context>
chip_gen: v5e
topology: v5e:2x2
jax: 0.10.0
libtpu: 0.0.40
codegen_flags: <defaults>
</compile_context>

<pallas_src>
import functools

import jax
import jax.numpy as jnp
from jax import lax
from jax.experimental import pallas as pl
from jax.experimental.pallas import tpu as pltpu


def _round_up(x, m):
    return ((x + m - 1) // m) * m


def _cdiv(a, b):
    return (a + b - 1) // b


def blocknet_conv_kernel(wbt_ref, x_ref, out_ref):
    """One MXU matmul per batch tile, transposed (lane-dense) output.

    wbt_ref: (HOUT_PAD8, K)      banded conv weight, transposed (resident)
    x_ref:   (TILE_N, K)         flattened input rows for this batch tile
    out_ref: (HOUT_PAD8, TILE_N) conv output^T: hout on sublanes, batch on lanes
    """
    out_ref[...] = lax.dot_general(
        wbt_ref[...], x_ref[...],
        dimension_numbers=(((1,), (1,)), ((), ())),   # contract K: Wb^T . x^T
        preferred_element_type=jnp.float32,
    ).astype(out_ref.dtype)


def _banded_conv_weight_t(conv_w, H, hout, hout_pad8):
    """WbT[j, (j+i)*4 + w] = conv_w[i, w]; zeros elsewhere (rows j >= hout zero).

    Shape (hout_pad8, H*4).  Fine for small H (here H=16).
    # TODO(synk): for H >> 16, tile over hout blocks and contract only the
    # fs*4-wide band of x instead of materializing this O(H^2) dense weight.
    """
    fs = conv_w.shape[-2]
    fs4 = fs * 4
    wflat = conv_w.reshape(fs4).astype(jnp.float32)        # index i*4 + w
    j = jnp.arange(hout_pad8)[:, None]                     # (hout_pad8, 1) out row
    k = jnp.arange(H * 4)[None, :]                         # (1, H*4) flat in index
    d = k - 4 * j                                          # = i*4 + w when valid
    valid = (d >= 0) & (d < fs4) & (j < hout)
    return jnp.where(valid, wflat[jnp.clip(d, 0, fs4 - 1)], 0.0)


def _pick_batch_tiling(N, max_tile_n):
    """Return (tile_n, n_pad): tile_n a multiple of 128 (output lane dim),
    >= 2 grid steps when N allows (v7x megacore), bounded padding waste."""
    n128 = _round_up(max(N, 1), 128)
    units = n128 // 128
    max_units = max(max_tile_n // 128, 1)
    if units <= 1:
        return 128, 128
    num_tiles = max(2, _cdiv(units, max_units))
    tile_n = _cdiv(units, num_tiles) * 128
    n_pad = _round_up(N, tile_n)
    return tile_n, n_pad


@functools.partial(jax.jit, static_argnames=("filter_size", "max_tile_n"))
def blocknet_forward(x_nchw, conv_w, *, filter_size, max_tile_n=4096):
    """x_nchw: (N, 1, H, 4) float32, conv_w: (1, 1, fs, 4).
    Returns (N, H - fs + 1), matching BlockNet.forward (the dense head is
    dead code in the PyTorch module and is intentionally omitted)."""
    N, C, H, W = x_nchw.shape
    assert C == 1 and W == 4, "BlockNet expects 1 input channel and width 4"
    hout = H - filter_size + 1
    assert hout >= 1, "filter_size larger than H"
    K = H * 4
    hout_pad8 = _round_up(hout, 8)                 # sublane-only padding (16 here)

    tile_n, n_pad = _pick_batch_tiling(N, max_tile_n)
    grid = (n_pad // tile_n,)

    # Lane-friendly input layout: contiguous (N, H*4) rows; K stays 64 (no pad).
    x2d = x_nchw.reshape(N, K).astype(jnp.float32)
    if n_pad != N:
        x2d = jnp.pad(x2d, ((0, n_pad - N), (0, 0)))

    wbt = _banded_conv_weight_t(conv_w, H, hout, hout_pad8)   # (hout_pad8, K)

    # Double-buffered per-step footprint + headroom; tiny (~3 MiB at tile_n=4096).
    vmem_bytes = 4 * (2 * tile_n * (K + hout_pad8) + 2 * hout_pad8 * K) + (1 << 20)
    vmem_limit = int(min(max(vmem_bytes, 16 << 20), 64 << 20))

    out_t = pl.pallas_call(
        blocknet_conv_kernel,
        out_shape=jax.ShapeDtypeStruct((hout_pad8, n_pad), jnp.float32),
        grid=grid,
        in_specs=[
            pl.BlockSpec((hout_pad8, K), lambda i: (0, 0)),   # resident weights
            pl.BlockSpec((tile_n, K), lambda i: (i, 0)),      # batch tile of x
        ],
        out_specs=pl.BlockSpec((hout_pad8, tile_n), lambda i: (0, i)),
        compiler_params=pltpu.CompilerParams(
            dimension_semantics=("parallel",),
            vmem_limit_bytes=vmem_limit,
        ),
    )(wbt, x2d)

    # Strip padding and transpose the tiny (hout, N) slab back; fused under jit.
    return out_t[:hout, :N].T


def _reference_forward(x_nchw, conv_w, *, filter_size):
    """Pure-JAX reference of the returned value (valid conv, out width 1)."""
    N, _, H, _ = x_nchw.shape
    hout = H - filter_size + 1
    w = conv_w.reshape(filter_size, 4)
    cols = [jnp.sum(x_nchw[:, 0, r:r + filter_size, :] * w, axis=(1, 2))
            for r in range(hout)]
    return jnp.stack(cols, axis=1)  # (N, hout)


if __name__ == "__main__":
    # Small shapes consistent with the module: size(H)=16, filter_size=3, W=4.
    filter_size = 3
    size = 16          # H
    batch = 2
    hout = size - (filter_size - 1)

    key = jax.random.PRNGKey(0)
    kx, kw = jax.random.split(key, 2)

    x = jax.random.normal(kx, (batch, 1, size, 4), dtype=jnp.float32)
    conv_w = jax.random.normal(kw, (1, 1, filter_size, 4), dtype=jnp.float32) * 0.1
    # Note: BlockNet's nn.Linear (dense head) is computed-then-discarded in the
    # PyTorch forward; it does not affect the returned value and is omitted.

    out = blocknet_forward(x, conv_w, filter_size=filter_size)
    out = jax.block_until_ready(out)

    ref = _reference_forward(x, conv_w, filter_size=filter_size)
    assert out.shape == (batch, hout), out.shape
    assert jnp.allclose(out, ref, atol=1e-5, rtol=1e-5), "mismatch vs reference"

    print("KERNEL_OK")
</pallas_src>

<mosaic_0001>
module attributes {stable_mosaic.version = 11 : i64} {
  func.func @blocknet_conv_kernel(%arg0: i32, %arg1: memref<16x64xf32, #tpu.memory_space<vmem>>, %arg2: memref<128x64xf32, #tpu.memory_space<vmem>>, %arg3: memref<16x128xf32, #tpu.memory_space<vmem>>) attributes {dimension_semantics = [#tpu.dimension_semantics<parallel>], iteration_bounds = array<i64: 1>, scalar_prefetch = 0 : i64, scratch_operands = 0 : i64, tpu.core_type = #tpu.core_type<tc>, window_params = [{pipeline_mode = #tpu.pipeline_mode<synchronous>, transform_indices = @transform_0, window_bounds = array<i64: 16, 64>}, {transform_indices = @transform_1, window_bounds = array<i64: 128, 64>}, {transform_indices = @transform_2, window_bounds = array<i64: 16, 128>}]} {
    %c0 = arith.constant 0 : index
    %c0_0 = arith.constant 0 : index
    %0 = vector.load %arg1[%c0, %c0_0] : memref<16x64xf32, #tpu.memory_space<vmem>>, vector<16x64xf32>
    %c0_1 = arith.constant 0 : index
    %c0_2 = arith.constant 0 : index
    %1 = vector.load %arg2[%c0_1, %c0_2] : memref<128x64xf32, #tpu.memory_space<vmem>>, vector<128x64xf32>
    %cst = arith.constant dense<0.000000e+00> : vector<16x128xf32>
    %2 = tpu.matmul %0, %1, %cst {dimension_numbers = #tpu.dot_dimension_numbers<[1], [1], [0], [0], [0, 0, 1, 0], [], []>} : vector<16x64xf32>, vector<128x64xf32>, vector<16x128xf32> -> vector<16x128xf32>
    %c0_3 = arith.constant 0 : index
    %c0_4 = arith.constant 0 : index
    %3 = vector.load %arg3[%c0_3, %c0_4] : memref<16x128xf32, #tpu.memory_space<vmem>>, vector<16x128xf32>
    tpu.vector_store %arg3[%c0_3, %c0_4], %2 {strides = array<i32>} : memref<16x128xf32, #tpu.memory_space<vmem>>, vector<16x128xf32>,
    return
  }
  func.func @transform_0(%arg0: i32) -> (i32, i32) {
    %c0_i32 = arith.constant 0 : i32
    %c0_i32_0 = arith.constant 0 : i32
    %c0_i32_1 = arith.constant 0 : i32
    return %c0_i32, %c0_i32_0 : i32, i32
  }
  func.func @transform_1(%arg0: i32) -> (i32, i32) {
    %c0_i32 = arith.constant 0 : i32
    %c0_i32_0 = arith.constant 0 : i32
    return %arg0, %c0_i32 : i32, i32
  }
  func.func @transform_2(%arg0: i32) -> (i32, i32) {
    %c0_i32 = arith.constant 0 : i32
    %c0_i32_0 = arith.constant 0 : i32
    return %c0_i32, %arg0 : i32, i32
  }
}

</mosaic_0001>

<bundles_post_ra>
// kernel: blocknet_forward.1
= control target key start
LH: loop header
LB: loop body
LE: loop exit
PB: predicated region body
PF: predicated region fallthrough
CT: control target
= control target key end

     0   :  { %vm29_vm0 = vcmask 523264   ;;  %s256_s1 = inlined_call_operand.vmem [shape: f32[128,64], index: 1, kind: input, shape index: {}]   ;;  %s257_s0 = inlined_call_operand.vmem [shape: f32[16,64], index: 0, kind: input, shape index: {}]   ;;  %s258_s2 = inlined_call_operand.vmem [shape: f32[16,128], index: 2, kind: output, shape index: {}]  }
   0x1   :  { %v28_v0 = vld [vmem:[%s256_s1 + $0x78] sm:$0xff]  ;;  %v27_v1 = vld [vmem:[%s256_s1 + $0x70] sm:$0xff]  ;;  %v26_v2 = vld [vmem:[%s256_s1 + $0x68] sm:$0xff] }
   0x2   :  { %113 = vmatpush.xpose.msk.msra.mxu0 %vm29_vm0, %v28_v0  ;;  %131 = vmatpush.xpose.msk.msra.mxu1 %vm29_vm0, %v28_v0  ;;  %v25_v3 = vld [vmem:[%s256_s1 + $0x60] sm:$0xff]  ;;  %v24_v4 = vld [vmem:[%s256_s1 + $0x58] sm:$0xff]  ;;  %v23_v5 = vld [vmem:[%s256_s1 + $0x50] sm:$0xff] }
   0x3   :  { %v22_v6 = vld [vmem:[%s256_s1 + $0x48] sm:$0xff]  ;;  %v21_v7 = vld [vmem:[%s256_s1 + $0x40] sm:$0xff]  ;;  %v20_v8 = vld [vmem:[%s256_s1 + $0x38] sm:$0xff] }
   0x4   :  { %v19_v9 = vld [vmem:[%s256_s1 + $0x30] sm:$0xff]  ;;  %v18_v10 = vld [vmem:[%s256_s1 + $0x28] sm:$0xff]  ;;  %v17_v11 = vld [vmem:[%s256_s1 + $0x20] sm:$0xff] }
   0x5   :  { %v16_v12 = vld [vmem:[%s256_s1 + $0x18] sm:$0xff]  ;;  %v15_v13 = vld [vmem:[%s256_s1 + $0x10] sm:$0xff]  ;;  %v14_v14 = vld [vmem:[%s256_s1 + $0x8] sm:$0xff] }
   0x6   :  { %114 = vmatpush.xpose.msk.msra.mxu0 %vm29_vm0, %v27_v1  ;;  %132 = vmatpush.xpose.msk.msra.mxu1 %vm29_vm0, %v27_v1  ;;  %v13_v15 = vld [vmem:[%s256_s1] sm:$0xff]  ;;  %v12_v17 = vld [vmem:[%s257_s0 + $0x8] sm:$0xff] }
   0x7   :  { %v11_v16 = vld [vmem:[%s257_s0] sm:$0xff] }
   0xa   :  { %115 = vmatpush.xpose.msk.msra.mxu0 %vm29_vm0, %v26_v2  ;;  %133 = vmatpush.xpose.msk.msra.mxu1 %vm29_vm0, %v26_v2 }
   0xe   :  { %116 = vmatpush.xpose.msk.msra.mxu0 %vm29_vm0, %v25_v3  ;;  %134 = vmatpush.xpose.msk.msra.mxu1 %vm29_vm0, %v25_v3 }
  0x12   :  { %117 = vmatpush.xpose.msk.msra.mxu0 %vm29_vm0, %v24_v4  ;;  %135 = vmatpush.xpose.msk.msra.mxu1 %vm29_vm0, %v24_v4 }
  0x16   :  { %118 = vmatpush.xpose.msk.msra.mxu0 %vm29_vm0, %v23_v5  ;;  %136 = vmatpush.xpose.msk.msra.mxu1 %vm29_vm0, %v23_v5 }
  0x1a   :  { %119 = vmatpush.xpose.msk.msra.mxu0 %vm29_vm0, %v22_v6  ;;  %137 = vmatpush.xpose.msk.msra.mxu1 %vm29_vm0, %v22_v6 }
  0x1e   :  { %120 = vmatpush.xpose.msk.msra.mxu0 %vm29_vm0, %v21_v7  ;;  %138 = vmatpush.xpose.msk.msra.mxu1 %vm29_vm0, %v21_v7 }
  0x22   :  { %121 = vmatpush.xpose.msk.msra.mxu0 %vm29_vm0, %v20_v8  ;;  %139 = vmatpush.xpose.msk.msra.mxu1 %vm29_vm0, %v20_v8 }
  0x26   :  { %122 = vmatpush.xpose.msk.msra.mxu0 %vm29_vm0, %v19_v9  ;;  %140 = vmatpush.xpose.msk.msra.mxu1 %vm29_vm0, %v19_v9 }
  0x2a   :  { %123 = vmatpush.xpose.msk.msra.mxu0 %vm29_vm0, %v18_v10  ;;  %141 = vmatpush.xpose.msk.msra.mxu1 %vm29_vm0, %v18_v10 }
  0x2e   :  { %124 = vmatpush.xpose.msk.msra.mxu0 %vm29_vm0, %v17_v11  ;;  %142 = vmatpush.xpose.msk.msra.mxu1 %vm29_vm0, %v17_v11 }
  0x32   :  { %125 = vmatpush.xpose.msk.msra.mxu0 %vm29_vm0, %v16_v12  ;;  %143 = vmatpush.xpose.msk.msra.mxu1 %vm29_vm0, %v16_v12 }
  0x36   :  { %126 = vmatpush.xpose.msk.msra.mxu0 %vm29_vm0, %v15_v13  ;;  %144 = vmatpush.xpose.msk.msra.mxu1 %vm29_vm0, %v15_v13 }
  0x3a   :  { %127 = vmatpush.xpose.msk.msra.mxu0 %vm29_vm0, %v14_v14  ;;  %145 = vmatpush.xpose.msk.msra.mxu1 %vm29_vm0, %v14_v14 }
  0x3e   :  { %128 = vmatpush.xpose.msk.msra.mxu0 %vm29_vm0, %v13_v15  ;;  %146 = vmatpush.xpose.msk.msra.mxu1 %vm29_vm0, %v13_v15 }
  0x41   :  { %129 = vmatmul.msk.f32.vlgmr.msra.gmra.mxu0 %vm29_vm0, %v11_v16  ;;  %130 = vmatmul.msk.f32.vlgmr.msra.gmra.mxu1 %vm29_vm0, %v12_v17 }
  0xbe   :  { %v101_v18 = vpop.f32.mrf.mxu0  ;;  %v104_v19 = vpop.f32.mrf.mxu1 }
  0xbf   :  { %107 = vst [vmem:[%s258_s2] sm:$0xff] %v101_v18 }
  0xc0   :  { %108 = vst [vmem:[%s258_s2 + $0x8] sm:$0xff] %v104_v19 }

</bundles_post_ra>
